<compile_context>
chip_gen: v6e
topology: v6e:2x2x1
jax: 0.10.0
libtpu: 0.0.40
codegen_flags: <defaults>
</compile_context>

<pallas_src>
import math

import jax
import jax.numpy as jnp
from jax.experimental import pallas as pl
from jax.experimental.pallas import tpu as pltpu


# ----------------------------------------------------------------------------
# Kernel factory (d_model / n_heads are static closure constants).
# ----------------------------------------------------------------------------
def _make_oc_sa_kernel(d_model, n_heads):
    rows_wo = ((n_heads + 7) // 8) * 8          # expand block padded to 8 rows
    row_bbig = rows_wo + d_model                # fused bias row (bv | s_cls | 0)
    row_bo = row_bbig + 1                       # output-projection bias row

    def kernel(x_ref, wbig_ref, consts_ref, out_ref, am_ref):
        """CLS-query multi-head attention over object tokens for one batch block.

        x_ref      : [bb, n_objs, d_embed]   object latents (CLS token implicit zeros)
        wbig_ref   : [d_embed, P]            fused [Wv | Wk@qmat (CLS scores) | 0] weights
        consts_ref : [Rc, P]                 rows 0:H expand mask, rows 8:8+Dm = Wo,
                                             row 8+Dm = (bv | s_cls | 0), row 8+Dm+1 = bo
        out_ref    : [bb, d_model]           CLS-token output
        am_ref     : [bb, n_objs]            head-0 CLS-query attention * sqrt(n_objs)
        """
        bb, n_objs, d_embed = x_ref.shape
        P = wbig_ref.shape[1]
        n_rows = bb * n_objs
        s_tok = n_objs + 1

        bbig = consts_ref[row_bbig:row_bbig + 1, :]                         # [1, P]
        x2 = x_ref[...].reshape(n_rows, d_embed)

        # One fused MXU push: lanes 0:Dm = V(objects), lanes Dm:Dm+H = per-head
        # CLS-query scores vs. object keys (bias already folds bk-contribution).
        proj = jnp.dot(x2, wbig_ref[...],
                       preferred_element_type=jnp.float32) + bbig           # [N, P]

        s_obj = proj[:, d_model:d_model + n_heads].reshape(bb, n_objs, n_heads)
        s_cls = bbig[:, d_model:d_model + n_heads]                          # [1, H]

        # Softmax over the S = n_objs + 1 keys (CLS key handled analytically:
        # q_cls = bq, k_cls = bk, v_cls = bv because the CLS token is zero).
        m = jnp.maximum(jnp.max(s_obj, axis=1), s_cls)                      # [bb, H]
        e_obj = jnp.exp(s_obj - m[:, None, :])                              # [bb, n_objs, H]
        e_cls = jnp.exp(s_cls - m)                                          # [bb, H]
        denom = jnp.sum(e_obj, axis=1) + e_cls                              # [bb, H]
        inv = pl.reciprocal(denom, approx=True)                             # EUP slot
        p_obj = e_obj * inv[:, None, :]                                     # [bb, n_objs, H]
        p_cls = e_cls * inv                                                 # [bb, H]

        # Merged head->lane expansion (objects + CLS row) in ONE tiny matmul.
        p_all = jnp.concatenate([p_obj, p_cls[:, None, :]], axis=1)         # [bb, S, H]
        expand = consts_ref[0:n_heads, :]                                   # [H, P]
        e_all = jnp.dot(p_all.reshape(bb * s_tok, n_heads), expand,
                        preferred_element_type=jnp.float32)
        e_all = e_all.reshape(bb, s_tok, P)                                 # [bb, S, P]

        # Values: object rows come straight from proj; the CLS value row is bv
        # (= bbig lanes 0:Dm).  Lanes >= d_model of e_all are zero, so the score
        # lanes of proj / bbig never leak into the context.
        v_all = jnp.concatenate(
            [proj.reshape(bb, n_objs, P),
             jnp.broadcast_to(bbig.reshape(1, 1, P), (bb, 1, P))], axis=1)  # [bb, S, P]
        ctx = jnp.sum(e_all * v_all, axis=1)[:, :d_model]                   # [bb, Dm]

        wo = consts_ref[rows_wo:rows_wo + d_model, :d_model]                # [Dm, Dm]
        bo = consts_ref[row_bo:row_bo + 1, :d_model]                        # [1, Dm]
        out_ref[...] = jnp.dot(ctx, wo, preferred_element_type=jnp.float32) + bo

        # Head-0 CLS-query attention over object keys, pre-scaled (module's am).
        am_ref[...] = p_obj[:, :, 0] * math.sqrt(n_objs)

    return kernel


# ----------------------------------------------------------------------------
# Parameter packing (would normally happen once at module init).
# ----------------------------------------------------------------------------
def pack_oc_sa_params(params, n_heads):
    f32 = jnp.float32
    wk = params["wk"].astype(f32)
    wv = params["wv"].astype(f32)
    bk = params["bk"].astype(f32).reshape(1, -1)
    bv = params["bv"].astype(f32).reshape(1, -1)
    bq = params["bq"].astype(f32).reshape(1, -1)
    wo = params["wo"].astype(f32)
    bo = params["bo"].astype(f32).reshape(1, -1)
    d_embed, d_model = wk.shape
    assert d_model % n_heads == 0
    d_head = d_model // n_heads
    scale = 1.0 / math.sqrt(d_head)
    P = max(128, ((d_model + n_heads + 127) // 128) * 128)  # lane-padded width

    # head_mask[c, h] = 1 iff column c belongs to head h.
    head_mask = (jnp.arange(d_model)[:, None] // d_head
                 == jnp.arange(n_heads)[None, :]).astype(f32)               # [Dm, H]
    # CLS token is zeros => q_cls = bq, k_cls = bk, v_cls = bv.
    qmat_k = head_mask * bq.reshape(d_model, 1) * scale                     # [Dm, H]
    wscore = wk @ qmat_k                                                    # [De, H]
    sbias = bk @ qmat_k                                                     # [1, H] = CLS-key score

    # Fused projection weight: [Wv | Wscore | 0-pad] and its bias [bv | s_cls | 0].
    wbig = jnp.zeros((d_embed, P), f32)
    wbig = wbig.at[:, :d_model].set(wv)
    wbig = wbig.at[:, d_model:d_model + n_heads].set(wscore)

    bbig = jnp.zeros((1, P), f32)
    bbig = bbig.at[:, :d_model].set(bv)
    bbig = bbig.at[:, d_model:d_model + n_heads].set(sbias)

    # Constant slab (single DMA): expand mask | Wo | fused bias | bo, 8-row aligned.
    rows_wo = ((n_heads + 7) // 8) * 8
    row_bbig = rows_wo + d_model
    row_bo = row_bbig + 1
    Rc = ((row_bo + 1 + 7) // 8) * 8
    consts = jnp.zeros((Rc, P), f32)
    consts = consts.at[:n_heads, :d_model].set(head_mask.T)
    consts = consts.at[rows_wo:rows_wo + d_model, :d_model].set(wo)
    consts = consts.at[row_bbig, :].set(bbig[0])
    consts = consts.at[row_bo, :d_model].set(bo[0])

    return {"wbig": wbig, "consts": consts,
            "d_model": d_model, "n_heads": n_heads, "d_embed": d_embed}


# ----------------------------------------------------------------------------
# pallas_call wrapper.
# ----------------------------------------------------------------------------
def cls_mha_pallas(obj_latents, packed):
    """Returns (cls_out [bs, d_model], am_all [bs, n_objs] head-0 attn * sqrt(n_objs))."""
    bs, n_objs, d_embed = obj_latents.shape
    d_model = packed["d_model"]
    n_heads = packed["n_heads"]
    P = packed["wbig"].shape[1]
    Rc = packed["consts"].shape[0]
    f32 = jnp.float32

    # Size-gated 2-way batch split: only worthwhile (v7x 2-TC) when each block
    # carries hundreds of rows; at small sizes a single grid step is strictly
    # cheaper (the kernel is fixed-overhead bound).
    n_blocks = 2 if (bs % 16 == 0 and (bs // 2) * n_objs >= 256) else 1
    bb = bs // n_blocks

    kernel = _make_oc_sa_kernel(d_model, n_heads)
    rep = lambda b: (0, 0)
    out, am_all = pl.pallas_call(
        kernel,
        grid=(n_blocks,),
        in_specs=[
            pl.BlockSpec((bb, n_objs, d_embed), lambda b: (b, 0, 0)),  # x
            pl.BlockSpec((d_embed, P), rep),                           # fused proj weight
            pl.BlockSpec((Rc, P), rep),                                # constants slab
        ],
        out_specs=[
            pl.BlockSpec((bb, d_model), lambda b: (b, 0)),
            pl.BlockSpec((bb, n_objs), lambda b: (b, 0)),
        ],
        out_shape=[
            jax.ShapeDtypeStruct((bs, d_model), f32),
            jax.ShapeDtypeStruct((bs, n_objs), f32),
        ],
        compiler_params=pltpu.CompilerParams(dimension_semantics=("parallel",)),
    )(obj_latents.astype(f32), packed["wbig"], packed["consts"])
    return out, am_all


# ----------------------------------------------------------------------------
# ObjectCentricSelfAttention forward.
# ----------------------------------------------------------------------------
def object_centric_self_attention(obj_latents, packed):
    cls_out, am_all = cls_mha_pallas(obj_latents, packed)
    output = cls_out              # == MLMHA output[0] (CLS row), [bs, d_model]
    attn_maps = am_all[0:1, :]    # batch 0, head 0, object keys, already * sqrt(n_objs)
    return output, attn_maps


# ----------------------------------------------------------------------------
# Pure-JAX reference (full MHA over [CLS; objects]) for correctness checks.
# ----------------------------------------------------------------------------
def _mha_reference(x, params, n_heads):
    q = x @ params["wq"] + params["bq"]
    k = x @ params["wk"] + params["bk"]
    v = x @ params["wv"] + params["bv"]
    bs, s, d_model = q.shape
    dh = d_model // n_heads
    qh = q.reshape(bs, s, n_heads, dh).transpose(0, 2, 1, 3)
    kh = k.reshape(bs, s, n_heads, dh).transpose(0, 2, 1, 3)
    vh = v.reshape(bs, s, n_heads, dh).transpose(0, 2, 1, 3)
    scores = jnp.einsum("bhqd,bhkd->bhqk", qh, kh) / math.sqrt(dh)
    probs = jax.nn.softmax(scores, axis=-1)
    ctx = jnp.einsum("bhqk,bhkd->bhqd", probs, vh)
    ctx = ctx.transpose(0, 2, 1, 3).reshape(bs, s, d_model)
    out = ctx @ params["wo"] + params["bo"]
    return out, probs


def init_params(key, d_embed, d_model):
    ks = jax.random.split(key, 8)
    std = 0.02
    return {
        "wq": jax.random.normal(ks[0], (d_embed, d_model), jnp.float32) * std,
        "bq": jax.random.normal(ks[4], (1, d_model), jnp.float32) * std,
        "wk": jax.random.normal(ks[1], (d_embed, d_model), jnp.float32) * std,
        "bk": jax.random.normal(ks[5], (1, d_model), jnp.float32) * std,
        "wv": jax.random.normal(ks[2], (d_embed, d_model), jnp.float32) * std,
        "bv": jax.random.normal(ks[6], (1, d_model), jnp.float32) * std,
        "wo": jax.random.normal(ks[3], (d_model, d_model), jnp.float32) * std,
        "bo": jax.random.normal(ks[7], (1, d_model), jnp.float32) * std,
    }


if __name__ == "__main__":
    bs, n_objs, d_obj_latents = 2, 8, 32
    d_model, n_heads = 32, 4

    key = jax.random.PRNGKey(0)
    k_param, k_in = jax.random.split(key)
    params = init_params(k_param, d_obj_latents, d_model)
    obj_latents = jax.random.normal(k_in, (bs, n_objs, d_obj_latents), jnp.float32)

    packed = pack_oc_sa_params(params, n_heads)

    output, attn_maps = object_centric_self_attention(obj_latents, packed)
    output = jax.block_until_ready(output)
    attn_maps = jax.block_until_ready(attn_maps)

    # Full head-0 attention rows for every batch element (kernel output).
    _, am_all = cls_mha_pallas(obj_latents, packed)
    am_all = jax.block_until_ready(am_all)

    # Pure-JAX reference over the explicit [CLS; objects] sequence.
    cls = jnp.zeros((bs, 1, d_obj_latents), jnp.float32)
    x_full = jnp.concatenate([cls, obj_latents], axis=1)
    ref_out, ref_probs = _mha_reference(x_full, params, n_heads)
    ref_output = ref_out[:, 0, :]                                    # CLS output, [bs, d_model]
    ref_am_all = ref_probs[:, 0, 0, 1:] * math.sqrt(n_objs)          # [bs, n_objs] (head 0)
    ref_am = ref_am_all[0:1, :]                                      # module's attn_maps

    assert output.shape == (bs, d_model)
    assert attn_maps.shape == (1, n_objs)
    assert jnp.allclose(output, ref_output, rtol=2e-3, atol=2e-3)
    assert jnp.allclose(attn_maps, ref_am, rtol=2e-3, atol=2e-3)
    assert jnp.allclose(am_all, ref_am_all, rtol=2e-3, atol=2e-3)

    print("KERNEL_OK")
</pallas_src>

<mosaic_0001>
module attributes {stable_mosaic.version = 11 : i64} {
  func.func @kernel(%arg0: i32, %arg1: memref<2x8x32xf32, #tpu.memory_space<vmem>>, %arg2: memref<32x128xf32, #tpu.memory_space<vmem>>, %arg3: memref<48x128xf32, #tpu.memory_space<vmem>>, %arg4: memref<2x32xf32, #tpu.memory_space<vmem>>, %arg5: memref<2x8xf32, #tpu.memory_space<vmem>>) attributes {dimension_semantics = [#tpu.dimension_semantics<parallel>], iteration_bounds = array<i64: 1>, scalar_prefetch = 0 : i64, scratch_operands = 0 : i64, tpu.core_type = #tpu.core_type<tc>, window_params = [{transform_indices = @transform_0, window_bounds = array<i64: 2, 8, 32>}, {pipeline_mode = #tpu.pipeline_mode<synchronous>, transform_indices = @transform_1, window_bounds = array<i64: 32, 128>}, {pipeline_mode = #tpu.pipeline_mode<synchronous>, transform_indices = @transform_2, window_bounds = array<i64: 48, 128>}, {transform_indices = @transform_3, window_bounds = array<i64: 2, 32>}, {transform_indices = @transform_4, window_bounds = array<i64: 2, 8>}]} {
    %c40 = arith.constant 40 : index
    %c0 = arith.constant 0 : index
    %0 = vector.load %arg3[%c40, %c0] : memref<48x128xf32, #tpu.memory_space<vmem>>, vector<1x128xf32>
    %c0_0 = arith.constant 0 : index
    %c0_1 = arith.constant 0 : index
    %c0_2 = arith.constant 0 : index
    %1 = vector.load %arg1[%c0_0, %c0_1, %c0_2] : memref<2x8x32xf32, #tpu.memory_space<vmem>>, vector<2x8x32xf32>
    %2 = vector.shape_cast %1 : vector<2x8x32xf32> to vector<16x32xf32>
    %c0_3 = arith.constant 0 : index
    %c0_4 = arith.constant 0 : index
    %3 = vector.load %arg2[%c0_3, %c0_4] : memref<32x128xf32, #tpu.memory_space<vmem>>, vector<32x128xf32>
    %cst = arith.constant dense<0.000000e+00> : vector<16x128xf32>
    %4 = tpu.matmul %2, %3, %cst {dimension_numbers = #tpu.dot_dimension_numbers<[1], [0], [0], [1], [0, 0, 1, 1], [], []>} : vector<16x32xf32>, vector<32x128xf32>, vector<16x128xf32> -> vector<16x128xf32>
    %5 = vector.broadcast %0 : vector<1x128xf32> to vector<16x128xf32>
    %6 = arith.addf %4, %5 : vector<16x128xf32>
    %7 = vector.extract_strided_slice %6 {offsets = [0, 32], sizes = [16, 4], strides = [1, 1]} : vector<16x128xf32> to vector<16x4xf32>
    %8 = vector.shape_cast %7 : vector<16x4xf32> to vector<2x8x4xf32>
    %9 = vector.extract_strided_slice %0 {offsets = [0, 32], sizes = [1, 4], strides = [1, 1]} : vector<1x128xf32> to vector<1x4xf32>
    %cst_5 = arith.constant dense<0xFF800000> : vector<2x4xf32>
    %10 = vector.multi_reduction <maximumf>, %8, %cst_5 [1] : vector<2x8x4xf32> to vector<2x4xf32>
    %11 = vector.broadcast %9 : vector<1x4xf32> to vector<2x4xf32>
    %12 = arith.maximumf %10, %11 : vector<2x4xf32>
    %13 = vector.shape_cast %12 : vector<2x4xf32> to vector<2x1x4xf32>
    %14 = vector.broadcast %13 : vector<2x1x4xf32> to vector<2x8x4xf32>
    %15 = arith.subf %8, %14 : vector<2x8x4xf32>
    %16 = math.exp %15 : vector<2x8x4xf32>
    %17 = vector.broadcast %9 : vector<1x4xf32> to vector<2x4xf32>
    %18 = arith.subf %17, %12 : vector<2x4xf32>
    %19 = math.exp %18 : vector<2x4xf32>
    %cst_6 = arith.constant dense<0.000000e+00> : vector<2x4xf32>
    %20 = vector.multi_reduction <add>, %16, %cst_6 [1] : vector<2x8x4xf32> to vector<2x4xf32>
    %21 = arith.addf %20, %19 : vector<2x4xf32>
    %22 = tpu.reciprocal %21 {approx = true} : vector<2x4xf32> -> vector<2x4xf32>
    %23 = vector.shape_cast %22 : vector<2x4xf32> to vector<2x1x4xf32>
    %24 = vector.broadcast %23 : vector<2x1x4xf32> to vector<2x8x4xf32>
    %25 = arith.mulf %16, %24 : vector<2x8x4xf32>
    %26 = arith.mulf %19, %22 : vector<2x4xf32>
    %27 = vector.shape_cast %26 : vector<2x4xf32> to vector<2x1x4xf32>
    %28 = tpu.concatenate %25, %27 in 1 : vector<2x8x4xf32>, vector<2x1x4xf32> -> vector<2x9x4xf32>
    %c0_7 = arith.constant 0 : index
    %c0_8 = arith.constant 0 : index
    %29 = vector.load %arg3[%c0_7, %c0_8] : memref<48x128xf32, #tpu.memory_space<vmem>>, vector<4x128xf32>
    %30 = vector.shape_cast %28 : vector<2x9x4xf32> to vector<18x4xf32>
    %cst_9 = arith.constant dense<0.000000e+00> : vector<18x128xf32>
    %31 = tpu.matmul %30, %29, %cst_9 {dimension_numbers = #tpu.dot_dimension_numbers<[1], [0], [0], [1], [0, 0, 1, 1], [], []>} : vector<18x4xf32>, vector<4x128xf32>, vector<18x128xf32> -> vector<18x128xf32>
    %32 = vector.shape_cast %31 : vector<18x128xf32> to vector<2x9x128xf32>
    %33 = vector.shape_cast %6 : vector<16x128xf32> to vector<2x8x128xf32>
    %34 = vector.shape_cast %0 : vector<1x128xf32> to vector<1x1x128xf32>
    %35 = vector.shape_cast %34 : vector<1x1x128xf32> to vector<1x1x128xf32>
    %36 = vector.broadcast %35 : vector<1x1x128xf32> to vector<2x1x128xf32>
    %37 = tpu.concatenate %33, %36 in 1 : vector<2x8x128xf32>, vector<2x1x128xf32> -> vector<2x9x128xf32>
    %38 = arith.mulf %32, %37 : vector<2x9x128xf32>
    %cst_10 = arith.constant dense<0.000000e+00> : vector<2x128xf32>
    %39 = vector.multi_reduction <add>, %38, %cst_10 [1] : vector<2x9x128xf32> to vector<2x128xf32>
    %40 = vector.extract_strided_slice %39 {offsets = [0, 0], sizes = [2, 32], strides = [1, 1]} : vector<2x128xf32> to vector<2x32xf32>
    %c8 = arith.constant 8 : index
    %c0_11 = arith.constant 0 : index
    %41 = vector.load %arg3[%c8, %c0_11] : memref<48x128xf32, #tpu.memory_space<vmem>>, vector<32x32xf32>
    %c41 = arith.constant 41 : index
    %c0_12 = arith.constant 0 : index
    %42 = vector.load %arg3[%c41, %c0_12] : memref<48x128xf32, #tpu.memory_space<vmem>>, vector<1x32xf32>
    %cst_13 = arith.constant dense<0.000000e+00> : vector<2x32xf32>
    %43 = tpu.matmul %40, %41, %cst_13 {dimension_numbers = #tpu.dot_dimension_numbers<[1], [0], [0], [1], [0, 0, 1, 1], [], []>} : vector<2x32xf32>, vector<32x32xf32>, vector<2x32xf32> -> vector<2x32xf32>
    %44 = vector.broadcast %42 : vector<1x32xf32> to vector<2x32xf32>
    %45 = arith.addf %43, %44 : vector<2x32xf32>
    %c0_14 = arith.constant 0 : index
    %c0_15 = arith.constant 0 : index
    %46 = vector.load %arg4[%c0_14, %c0_15] : memref<2x32xf32, #tpu.memory_space<vmem>>, vector<2x32xf32>
    tpu.vector_store %arg4[%c0_14, %c0_15], %45 {strides = array<i32>} : memref<2x32xf32, #tpu.memory_space<vmem>>, vector<2x32xf32>,
    %47 = vector.extract_strided_slice %25 {offsets = [0, 0, 0], sizes = [2, 8, 1], strides = [1, 1, 1]} : vector<2x8x4xf32> to vector<2x8x1xf32>
    %48 = vector.shape_cast %47 : vector<2x8x1xf32> to vector<2x8xf32>
    %cst_16 = arith.constant 2.82842708 : f32
    %49 = vector.broadcast %cst_16 : f32 to vector<2x8xf32>
    %50 = arith.mulf %48, %49 : vector<2x8xf32>
    %c0_17 = arith.constant 0 : index
    %c0_18 = arith.constant 0 : index
    %51 = vector.load %arg5[%c0_17, %c0_18] : memref<2x8xf32, #tpu.memory_space<vmem>>, vector<2x8xf32>
    tpu.vector_store %arg5[%c0_17, %c0_18], %50 {strides = array<i32>} : memref<2x8xf32, #tpu.memory_space<vmem>>, vector<2x8xf32>,
    return
  }
  func.func @transform_0(%arg0: i32) -> (i32, i32, i32) {
    %c0_i32 = arith.constant 0 : i32
    %c0_i32_0 = arith.constant 0 : i32
    %c0_i32_1 = arith.constant 0 : i32
    return %arg0, %c0_i32, %c0_i32_0 : i32, i32, i32
  }
  func.func @transform_1(%arg0: i32) -> (i32, i32) {
    %c0_i32 = arith.constant 0 : i32
    %c0_i32_0 = arith.constant 0 : i32
    %c0_i32_1 = arith.constant 0 : i32
    return %c0_i32, %c0_i32_0 : i32, i32
  }
  func.func @transform_2(%arg0: i32) -> (i32, i32) {
    %c0_i32 = arith.constant 0 : i32
    %c0_i32_0 = arith.constant 0 : i32
    %c0_i32_1 = arith.constant 0 : i32
    return %c0_i32, %c0_i32_0 : i32, i32
  }
  func.func @transform_3(%arg0: i32) -> (i32, i32) {
    %c0_i32 = arith.constant 0 : i32
    %c0_i32_0 = arith.constant 0 : i32
    return %arg0, %c0_i32 : i32, i32
  }
  func.func @transform_4(%arg0: i32) -> (i32, i32) {
    %c0_i32 = arith.constant 0 : i32
    %c0_i32_0 = arith.constant 0 : i32
    return %arg0, %c0_i32 : i32, i32
  }
}

</mosaic_0001>

<bundles_post_ra>
// kernel: tpu_custom_call.1
= control target key start
LH: loop header
LB: loop body
LE: loop exit
PB: predicated region body
PF: predicated region fallthrough
CT: control target
= control target key end

     0   :  { %10 = vsyncpa [#allocation3], 0  ;;  %s1597_s0 = inlined_call_operand.hbm [shape: f32[2,8,32], index: 0, kind: input, shape index: {}]   ;;  %s1598_s1 = inlined_call_operand.hbm [shape: f32[32,128], index: 1, kind: input, shape index: {}]   ;;  %s1599_s2 = inlined_call_operand.hbm [shape: f32[48,128], index: 2, kind: input, shape index: {}]   ;;  %s1600_s3 = inlined_call_operand.hbm [shape: f32[2,32], index: 3, kind: output, shape index: {0}]   ;;  %s1601_s4 = inlined_call_operand.hbm [shape: f32[2,8], index: 4, kind: output, shape index: {1}]  }
   0x1   :  { %11 = vsyncpa [#allocation6], 0 }
   0x2   :  { %12 = vsyncpa [#allocation4], 0 }
   0x3   :  { %13 = vsyncpa [#allocation10], 0  ;;  %s1380_s15 = smov [#allocation5]   ;;  %s1381_s17 = smov [#allocation2]  }
   0x4   :  { %s31_s16 = sshll.u32 %s1380_s15, 4  ;;  %s19_s18 = sshll.u32 %s1381_s17, 4  ;;  %s32_s16 = int_to_ptr.vmem [resolvable:$true] %s31_s16  ;;  %s20_s18 = int_to_ptr.vmem [resolvable:$true] %s19_s18 }
   0x5   :  { %s1280_s19 = scalar_lea.vmem %s32_s16, 512  ;;  %p1285_p1 = scmp.lt.s32.totalorder %s32_s16, %s32_s16 }
   0x6   :  { %p1281_p0 = scmp.ne.s32.totalorder %s32_s16, %s1280_s19  ;;  %p1286_p2 = scmp.lt.s32.totalorder %s1280_s19, %s1280_s19 }
   0x8   :  { %p1287_p3 = por %p1286_p2, %p1285_p1 }
   0xa   :  { %p1288_p4 = pnand %p1287_p3, %p1281_p0 }
   0xc   :  { %1291 = shalt.err (!%p1288_p4)
}
   0xd   :  { %s1382_s20 = smov 128   ;;  %s1383_s21 = smov 8  }
   0xe   :  { %37 = dma.hbm_to_vmem [thread:$0]  %s1598_s1, 512, %s32_s16, [#allocation6], %s1382_s20, %s1382_s20, %s1383_s21  }
   0xf   :  { %s1300_s24 = scalar_lea.vmem %s20_s18, 256  ;;  %p1305_p6 = scmp.lt.s32.totalorder %s20_s18, %s20_s18 }
  0x10   :  { %p1301_p5 = scmp.ne.s32.totalorder %s20_s18, %s1300_s24  ;;  %p1306_p7 = scmp.lt.s32.totalorder %s1300_s24, %s1300_s24 }
  0x12   :  { %p1307_p8 = por %p1306_p7, %p1305_p6 }
  0x14   :  { %p1308_p9 = pnand %p1307_p8, %p1301_p5 }
  0x16   :  { %1311 = shalt.err (!%p1308_p9)
}
  0x17   :  { %25 = dma.hbm_to_vmem [thread:$0]  %s1597_s0, 256, %s20_s18, [#allocation3], %s1382_s20, %s1382_s20, %s1383_s21  }
  0x18   :  { %s1384_s27 = smov [#allocation7]  }
  0x19   :  { %s43_s28 = sshll.u32 %s1384_s27, 4  ;;  %s44_s28 = int_to_ptr.vmem [resolvable:$true] %s43_s28 }
  0x1a   :  { %s1320_s29 = scalar_lea.vmem %s44_s28, 768  ;;  %p1325_p11 = scmp.lt.s32.totalorder %s44_s28, %s44_s28 }
  0x1b   :  { %p1321_p10 = scmp.ne.s32.totalorder %s44_s28, %s1320_s29  ;;  %p1326_p12 = scmp.lt.s32.totalorder %s1320_s29, %s1320_s29 }
  0x1d   :  { %p1327_p13 = por %p1326_p12, %p1325_p11 }
  0x1f   :  { %p1328_p0 = pnand %p1327_p13, %p1321_p10 }
  0x21   :  { %1331 = shalt.err (!%p1328_p0)
}
  0x22   :  { %49 = dma.hbm_to_vmem [thread:$0]  %s1599_s2, 768, %s44_s28, [#allocation6], %s1382_s20, %s1382_s20, %s1383_s21  }
  0x23   :  { %1372 = dma.done.wait [#allocation3], 256  }
  0x24   :  { %1373 = vsyncadd [#allocation3], 4294967040 }
  0x25   :  { %1374 = dma.done.wait [#allocation6], 1280  }
  0x26   :  { %1375 = vsyncadd [#allocation6], 4294966016  ;;  %vm70_vm0 = vcmask 261120   ;;  %v65_v0 = vld [vmem:[#allocation5 + $0x18] sm:$0xff]  ;;  %v64_v1 = vld [vmem:[#allocation5 + $0x10] sm:$0xff]  ;;  %v1385_v6 = vmov 32   ;;  %v66_v7 = vlaneseq }
  0x27   :  { %1213 = vmatprep.subr.mxu0 %v65_v0  ;;  %v60_v2 = vld [vmem:[#allocation2] sm:$0xff]  ;;  %v63_v3 = vld [vmem:[#allocation5 + $0x8] sm:$0xff]  ;;  %v62_v4 = vld [vmem:[#allocation5] sm:$0xff]  ;;  %1260 = vset.pattern.permute.xlu1 %v1385_v6  ;;  %vm152_vm1 = vcmask 294144   ;;  %vm186_vm2 = vcmask 1041409   ;;  %vm508_vm3 = vcmask 1043456  }
  0x28   :  { %1214 = vmatpush3.msra.mxu0 %v65_v0  ;;  %1221 = vmatprep.mubr.msk.f32.mxu0 %vm70_vm0, %v60_v2  ;;  %v61_v5 = vld [vmem:[#allocation2 + $0x8] sm:$0xff]  ;;  %v1429_v8 = vshrl.u32 %v66_v7, 7  ;;  %v1434_v10 = vld [vmem:[#allocation7 + $0x28] sm:$0x1]  ;;  %v1386_v62 = vmov 1966171168  }
  0x29   :  { %1215 = vmatprep.subr.mxu0 %v64_v1  ;;  %1261 = vset.pattern.permute.xlu0 %v1385_v6  ;;  %v232_v63 = vunpack.c.l.s4 %v1386_v62  ;;  %v253_v62 = vld [vmem:[#allocation7] sm:$0xf]  ;;  %vm1388_vm4 = vmmov 0   ;;  %s1389_s0 = smov 96   ;;  %vm501_vm5 = vcmask 31744   ;;  %vm1156_vm6 = vcmask 58368  }
  0x2a   :  { %1216 = vmatpush3.msra.mxu0 %v64_v1  ;;  %v1432_v9 = vsub.s32 0, %v1429_v8  ;;  %vm1031_vm7 = vcmask 1040384   ;;  %s1390_s2 = smov [#allocation9]  }
  0x2b   :  { %1217 = vmatprep.subr.mxu0 %v63_v3  ;;  %v233_v0 = vunpack.c.0.s8 %v232_v63  ;;  %s1174_s5 = sshll.u32 %s1390_s2, 4  ;;  %s1175_s5 = int_to_ptr.vmem [resolvable:$true] %s1174_s5 }
  0x2c   :  { %1218 = vmatpush3.msra.mxu0 %v63_v3  ;;  %v69_v11 = vrot.slane %v1434_v10, %v1432_v9  ;;  %s1332_s6 = scalar_lea.vmem %s1175_s5, 32  ;;  %p1337_p2 = scmp.lt.s32.totalorder %s1175_s5, %s1175_s5 }
  0x2d   :  { %1219 = vmatprep.subr.mxu0 %v62_v4  ;;  %p1333_p1 = scmp.ne.s32.totalorder %s1175_s5, %s1332_s6  ;;  %p1338_p3 = scmp.lt.s32.totalorder %s1332_s6, %s1332_s6 }
  0x2e   :  { %1220 = vmatpush3.msra.mxu0 %v62_v4 }
  0x2f   :  { %1222 = vmatmul.mubr.msk.f32.vlgmr.msra.gmra.mxu0 %vm70_vm0, %v61_v5  ;;  %v1455_v5 = vsub.s32 %v233_v0, %v1429_v8  ;;  %p1339_p4 = por %p1338_p3, %p1337_p2 }
  0x31   :  { %p1340_p5 = pnand %p1339_p4, %p1333_p1 }
  0xef   :  { %v1223_v12 = vpop.f32.mrf.mxu0 }
  0xf0   :  { %v1438_v13 = vadd.f32 %v1223_v12, %v69_v11 }
  0xf1   :  { %v143_v14 = vpop.f32.mrf.mxu0 }
  0xf2   :  { %v160_v15 = vsel %vm152_vm1, %v1438_v13, -inf  ;;  %v1442_v16 = vadd.f32 %v143_v14, %v69_v11 }
  0xf3   :  { %v161_v17 = vrot.slane %v160_v15, 4 }
  0xf4   :  { %v153_v18 = vsel %vm152_vm1, %v1442_v16, -inf }
  0xf5   :  { %v162_v19 = vmax.f32 %v160_v15, %v161_v17  ;;  %v154_v20 = vrot.slane %v153_v18, 4 }
  0xf7   :  { %v163_v21 = vrot.slane %v162_v19, 2  ;;  %v155_v22 = vmax.f32 %v153_v18, %v154_v20 }
  0xf9   :  { %v164_v23 = vmax.f32 %v162_v19, %v163_v21  ;;  %v156_v24 = vrot.slane %v155_v22, 2 }
  0xfb   :  { %v165_v25 = vrot.slane %v164_v23, 1  ;;  %v157_v26 = vmax.f32 %v155_v22, %v156_v24 }
  0xfd   :  { %v166_v27 = vmax.f32 %v164_v23, %v165_v25  ;;  %v158_v28 = vrot.slane %v157_v26, 1 }
  0xff   :  { %v168_v29 = vmax.f32 %v166_v27, %v69_v11  ;;  %v159_v30 = vmax.f32 %v157_v26, %v158_v28 }
 0x101   :  { %v176_v31 = vrot.slane %v168_v29, %v1432_v9  ;;  %v185_v32 = vrot.slane %v168_v29, 7  ;;  %v167_v33 = vmax.f32 %v159_v30, %v69_v11 }
 0x103   :  { %v178_v34 = vsub.f32 %v1438_v13, %v176_v31  ;;  %v172_v35 = vrot.slane %v167_v33, %v1432_v9  ;;  %v187_v38 = vsel %vm186_vm2, %v185_v32, %v167_v33 }
 0x104   :  { %v189_v40 = vsub.f32 %v69_v11, %v187_v38 }
 0x105   :  { %v181_v36 = vmul.f32 1.442695, %v178_v34  ;;  %v177_v37 = vsub.f32 %v1442_v16, %v172_v35 }
 0x106   :  { %v190_v41 = vmul.f32 1.442695, %v189_v40 }
 0x107   :  { %1262 = vpow2.f32 %v181_v36  ;;  %v179_v39 = vmul.f32 1.442695, %v177_v37 }
 0x109   :  { %1264 = vpow2.f32 %v179_v39 }
 0x10a   :  { %1266 = vpow2.f32 %v190_v41 }
 0x114   :  { %v1263_v42 = vpop.eup %1262 }
 0x115   :  { %v199_v43 = vsel %vm152_vm1, %v1263_v42, 0.0 }
 0x116   :  { %v1265_v44 = vpop.eup %1264  ;;  %v200_v45 = vrot.slane %v199_v43, 4 }
 0x117   :  { %v192_v46 = vsel %vm152_vm1, %v1265_v44, 0.0  ;;  %v1267_v53 = vpop.eup %1266 }
 0x118   :  { %v201_v47 = vadd.f32 %v200_v45, %v199_v43  ;;  %v193_v48 = vrot.slane %v192_v46, 4  ;;  %v207_v58 = vrot.slane %v1267_v53, 1 }
 0x11a   :  { %v202_v49 = vrot.slane %v201_v47, 2  ;;  %v194_v50 = vadd.f32 %v193_v48, %v192_v46 }
 0x11c   :  { %v203_v51 = vadd.f32 %v202_v49, %v201_v47  ;;  %v195_v52 = vrot.slane %v194_v50, 2 }
 0x11e   :  { %v204_v54 = vrot.slane %v203_v51, 1  ;;  %v196_v55 = vadd.f32 %v195_v52, %v194_v50 }
 0x120   :  { %v205_v56 = vadd.f32 %v204_v54, %v203_v51  ;;  %v197_v57 = vrot.slane %v196_v55, 1 }
 0x122   :  { %v198_v59 = vadd.f32 %v197_v57, %v196_v55  ;;  %v211_v60 = vadd.f32 %v207_v58, %v205_v56 }
 0x124   :  { %v210_v61 = vadd.f32 %v1267_v53, %v198_v59  ;;  %1268 = vrcp.f32 %v211_v60 }
 0x126   :  { %1270 = vrcp.f32 %v210_v61 }
 0x131   :  { %v1269_v1 = vpop.eup %1268 }
 0x132   :  { %v221_v2 = vrot.slane %v1269_v1, %v1432_v9  ;;  %v226_v3 = vrot.slane %v1269_v1, 7 }
 0x133   :  { %v1271_v4 = vpop.eup %1270 }
 0x134   :  { %v1457_v6 = vmul.f32 %v1263_v42, %v221_v2  ;;  %v227_v11 = vsel %vm186_vm2, %v226_v3, %v1271_v4  ;;  %v217_v12 = vrot.slane %v1271_v4, %v1432_v9  ;;  %v1387_v4 = vmov 0.0  }
 0x135   :  { %v229_v14 = vmul.f32 %v1267_v53, %v227_v11  ;;  %1224 = vmatprep.subr.mxu0 %v1387_v4  ;;  %1246 = vmatprep.subr.mxu1 %v1387_v4 }
 0x136   :  { %v319_v15 = vcombine.high %v1457_v6, %v1457_v6  ;;  %v1463_v17 = vmul.f32 %v1265_v44, %v217_v12  ;;  %v326_v18 = vrot.slane %v1457_v6, %v1455_v5  ;;  %1225 = vmatpush3.msk.msra.mxu0 %vm508_vm3, %v253_v62  ;;  %1226 = vmatprep.mubr.msk.f32.mxu0 %vm1388_vm4, %v1387_v4 }
 0x137   :  { %v237_v19 = vrot.slane %v229_v14, %v1455_v5  ;;  %1247 = vmatpush3.msk.msra.mxu1 %vm508_vm3, %v253_v62  ;;  %1229 = vmatprep.mubr.msk.f32.mxu1 %vm1388_vm4, %v1387_v4 }
 0x138   :  { %v333_v20 = vrot.slane %v319_v15, %v1455_v5  ;;  %v256_v21 = vcombine.high %v1463_v17, %v1463_v17  ;;  %v263_v22 = vrot.slane %v1463_v17, %v1455_v5  ;;  %v334_v24 = vcombine.high %v326_v18, %v326_v18  ;;  %1235 = vmatprep.subr.mxu1 %v1387_v4 }
 0x139   :  { %v238_v9 = vcombine.high %v237_v19, %v237_v19  ;;  %v245_v23 = vrot.slane %v237_v19, %v1455_v5  ;;  %v342_v25 = vrot.slane %v326_v18, %v1455_v5 }
 0x13a   :  { %v335_v26 = vcombine.high %v333_v20, %v333_v20  ;;  %v349_v27 = vrot.slane %v333_v20, %v1455_v5  ;;  %v270_v28 = vrot.slane %v256_v21, %v1455_v5  ;;  %v271_v29 = vcombine.high %v263_v22, %v263_v22 }
 0x13b   :  { %v252_v30 = vrot.slane %v238_v9, %v1455_v5  ;;  %v279_v31 = vrot.slane %v263_v22, %v1455_v5  ;;  %v311_v32 = vrot.slane %v245_v23, %v1455_v5  ;;  %v356_v33 = vrot.slane %v334_v24, %v1455_v5 }
 0x13c   :  { %v363_v34 = vrot.slane %v335_v26, %v1455_v5  ;;  %v365_v35 = vcombine.high %v349_v27, %v349_v27  ;;  %v272_v36 = vcombine.high %v270_v28, %v270_v28  ;;  %v286_v37 = vrot.slane %v270_v28, %v1455_v5 }
 0x13d   :  { %v374_v38 = vrot.slane %v252_v30, %v1455_v5  ;;  %v293_v39 = vrot.slane %v271_v29, %v1455_v5  ;;  %v318_v40 = vrot.slane %v311_v32, %v1455_v5  ;;  %v364_v41 = vcombine.high %v342_v25, %v342_v25  ;;  %v1050_v32 = vld [vmem:[#allocation7 + $0x18] sm:$0xff] }
 0x13e   :  { %v367_v42 = vcombine.high %v363_v34, %v363_v34  ;;  %v434_v43 = vcombine.low %v363_v34, %v365_v35  ;;  %v300_v44 = vrot.slane %v272_v36, %v1455_v5  ;;  %v366_v45 = vcombine.high %v356_v33, %v356_v33 }
 0x13f   :  { %v381_v46 = vrot.slane %v374_v38, %v1455_v5  ;;  %v382_v47 = vcombine.low %v279_v31, %v293_v39  ;;  %v1190_v48 = vcombine.high %v279_v31, %v293_v39  ;;  %v431_v49 = vcombine.low %v318_v40, %v342_v25  ;;  %v1051_v31 = vld [vmem:[#allocation7 + $0x20] sm:$0xff] }
 0x140   :  { %v384_v50 = vcombine.low %v286_v37, %v300_v44  ;;  %v1191_v51 = vcombine.high %v286_v37, %v300_v44  ;;  %v432_v52 = vcombine.low %v356_v33, %v364_v41  ;;  %v433_v53 = vcombine.low %v366_v45, %v349_v27  ;;  %v1049_v33 = vld [vmem:[#allocation7 + $0x10] sm:$0xff] }
 0x141   :  { %v480_v54 = vcombine.low %v367_v42, %v381_v46  ;;  %v392_v55 = vrot.slane %v382_v47, %v1455_v5  ;;  %v399_v56 = vrot.slane %v1190_v48, %v1455_v5  ;;  %v441_v57 = vrot.slane %v431_v49, %v1455_v5 }
 0x142   :  { %v406_v58 = vrot.slane %v384_v50, %v1455_v5  ;;  %v413_v59 = vrot.slane %v1191_v51, %v1455_v5  ;;  %v448_v60 = vrot.slane %v432_v52, %v1455_v5  ;;  %v455_v61 = vrot.slane %v433_v53, %v1455_v5 }
 0x143   :  { %v487_v63 = vrot.slane %v480_v54, %v1455_v5  ;;  %v414_v0 = vcombine.low %v392_v55, %v399_v56  ;;  %v462_v1 = vrot.slane %v434_v43, %v1455_v5  ;;  %v1134_v21 = vmul.f32 2.828427, %v1463_v17 }
 0x144   :  { %v415_v2 = vcombine.low %v406_v58, %v413_v59  ;;  %v463_v3 = vcombine.low %v441_v57, %v448_v60  ;;  %v1135_v9 = vmul.f32 2.828427, %v1457_v6  ;;  %v1145_v26 = vand.u32 127, %v66_v7  ;;  %v1048_v7 = vld [vmem:[#allocation7 + $0x8] sm:$0xff] }
 0x145   :  { %v494_v11 = vrot.slane %v487_v63, %v1455_v5  ;;  %v464_v12 = vcombine.low %v455_v61, %v462_v1  ;;  %v422_v14 = vrot.slane %v414_v0, %v1455_v5  ;;  %v806_v34 = vrot.slane %v1438_v13, %v1455_v5 }
 0x146   :  { %v429_v15 = vrot.slane %v415_v2, %v1455_v5  ;;  %v471_v19 = vrot.slane %v463_v3, %v1455_v5  ;;  %v1148_v17 = vsub.s32 %v1145_v26, %v1429_v8  ;;  %v736_v8 = vcombine.high %v1442_v16, %v1442_v16 }
 0x147   :  { %499 = vrot.lane.b32.xlu1 %v494_v11, %s1389_s0  ;;  %v478_v20 = vrot.slane %v464_v12, %v1455_v5  ;;  %v799_v35 = vcombine.high %v1438_v13, %v1438_v13  ;;  %v743_v36 = vrot.slane %v1442_v16, %v1455_v5  ;;  %v814_v38 = vcombine.high %v806_v34, %v806_v34 }
 0x148   :  { %v430_v18 = vcombine.low %v422_v14, %v429_v15  ;;  %v750_v37 = vrot.slane %v736_v8, %v1455_v5  ;;  %v1522_v42 = vrot.slane %v806_v34, %v1455_v5  ;;  %v791_v51 = vrot.slane %v1434_v10, %v1455_v5 }
 0x149   :  { %v479_v22 = vcombine.low %v471_v19, %v478_v20  ;;  %v813_v39 = vrot.slane %v799_v35, %v1455_v5  ;;  %v751_v40 = vcombine.high %v743_v36, %v743_v36  ;;  %v1525_v43 = vrot.slane %v814_v38, %v1455_v5 }
 0x14a   :  { %495 = vrot.lane.b32.xlu0 %v430_v18, %s1389_s0  ;;  %v752_v41 = vcombine.high %v750_v37, %v750_v37  ;;  %v759_v44 = vrot.slane %v743_v36, %v1455_v5  ;;  %v766_v13 = vrot.slane %v750_v37, %v1455_v5  ;;  %v844_v53 = vcombine.high %v1522_v42, %v1522_v42 }
 0x14b   :  { %1139 = vperm.xlu1 %1260, %v1134_v21   ;;  %v773_v16 = vrot.slane %v751_v40, %v1455_v5  ;;  %v815_v47 = vcombine.high %v813_v39, %v813_v39  ;;  %v1535_v52 = vrot.slane %v813_v39, %v1455_v5  ;;  %v846_v54 = vcombine.high %v1525_v43, %v1525_v43 }
 0x14c   :  { %v780_v46 = vrot.slane %v752_v41, %v1455_v5  ;;  %v781_v58 = vcombine.high %v759_v44, %v759_v44  ;;  %v782_v59 = vcombine.high %v766_v13, %v766_v13  ;;  %v1550_v12 = vrot.slane %v791_v51, %v1455_v5 }
 0x14d   :  { %v783_v60 = vcombine.high %v773_v16, %v773_v16  ;;  %v1544_v10 = vrot.slane %v815_v47, %v1455_v5 }
 0x14e   :  { %497 = vrot.lane.b32.xlu0 %v479_v22, %s1389_s0  ;;  %v784_v61 = vcombine.high %v780_v46, %v780_v46 }
 0x152   :  { %1142 = vperm.xlu0 %1261, %v1135_v9  }
 0x1b9   :  { %v500_v25 = vpop.permute.xlu1 %499 }
 0x1bc   :  { %v496_v23 = vpop.permute.xlu0 %495 }
 0x1bd   :  { %1227 = vmatmul.mubr.msk.f32.vlgmr.msra.gmra.mxu0 %vm501_vm5, %v496_v23 }
 0x1c0   :  { %v498_v24 = vpop.permute.xlu0 %497 }
 0x1c1   :  { %1230 = vmatmul.mubr.msk.f32.vlgmr.msra.gmra.mxu1 %vm501_vm5, %v498_v24 }
 0x1c2   :  { %1232 = vmatprep.mubr.msk.f32.mxu1 %vm1388_vm4, %v1387_v4  ;;  %1236 = vmatpush3.msra.mxu1 %v1051_v31 }
 0x1c3   :  { %1237 = vmatprep.subr.mxu1 %v1387_v4 }
 0x1c4   :  { %1238 = vmatpush3.msra.mxu1 %v1050_v32 }
 0x1c5   :  { %1233 = vmatmul.mubr.msk.f32.gmra.mxu1 %vm501_vm5, %v500_v25  ;;  %1239 = vmatprep.subr.mxu1 %v1387_v4 }
 0x1c6   :  { %1243 = vmatprep.mubr.msk.f32.mxu1 %vm1388_vm4, %v1387_v4  ;;  %v1140_v27 = vpop.permute.xlu1 %1139  ;;  %1240 = vmatpush3.msra.mxu1 %v1049_v33 }
 0x1c7   :  { %v1149_v29 = vrot.slane %v1140_v27, %v1148_v17  ;;  %1241 = vmatprep.subr.mxu1 %v1387_v4 }
 0x1c8   :  { %1242 = vmatpush3.msra.mxu1 %v1048_v7 }
 0x1cd   :  { %v1143_v28 = vpop.permute.xlu0 %1142 }
 0x1ce   :  { %v1153_v6 = vrot.slane %v1143_v28, %v1148_v17 }
 0x1d0   :  { %v1154_v30 = vsel %vm186_vm2, %v1153_v6, %v1149_v29 }
 0x1d1   :  { %1157 = vst.msk [vmem:[#allocation9] sm:$0x3] %vm1156_vm6, %v1154_v30 }
 0x27d   :  { %v578_v45 = vpop.f32.mrf.mxu0 }
 0x27e   :  { %v595_v48 = vcombine.high %v578_v45, %v578_v45  ;;  %v602_v49 = vrot.slane %v578_v45, %v1455_v5 }
 0x27f   :  { %v1228_v50 = vpop.f32.mrf.mxu0 }
 0x280   :  { %v609_v55 = vrot.slane %v595_v48, %v1455_v5  ;;  %v610_v56 = vcombine.high %v602_v49, %v602_v49  ;;  %v618_v57 = vrot.slane %v602_v49, %v1455_v5 }
 0x281   :  { %v583_v62 = vpop.f32.mrf.mxu1 }
 0x282   :  { %v611_v63 = vcombine.high %v609_v55, %v609_v55  ;;  %v625_v0 = vrot.slane %v609_v55, %v1455_v5  ;;  %v632_v1 = vrot.slane %v610_v56, %v1455_v5  ;;  %v640_v2 = vcombine.high %v618_v57, %v618_v57 }
 0x283   :  { %v865_v3 = vmul.f32 %v759_v44, %v618_v57  ;;  %v644_v4 = vcombine.high %v583_v62, %v583_v62  ;;  %v651_v11 = vrot.slane %v583_v62, %v1455_v5  ;;  %v1231_v14 = vpop.f32.mrf.mxu1  ;;  %v845_v56 = vcombine.high %v1535_v52, %v1535_v52 }
 0x284   :  { %v639_v15 = vrot.slane %v611_v63, %v1455_v5  ;;  %v641_v18 = vcombine.high %v625_v0, %v625_v0  ;;  %v642_v19 = vcombine.high %v632_v1, %v632_v1  ;;  %v866_v20 = vmul.f32 %v773_v16, %v632_v1 }
 0x285   :  { %v867_v21 = vmul.f32 %v781_v58, %v640_v2  ;;  %v869_v22 = vmul.f32 %v766_v13, %v625_v0  ;;  %v658_v9 = vrot.slane %v644_v4, %v1455_v5  ;;  %v659_v23 = vcombine.high %v651_v11, %v651_v11  ;;  %v588_v24 = vpop.f32.mrf.mxu1 }
 0x286   :  { %v643_v25 = vcombine.high %v639_v15, %v639_v15  ;;  %v868_v26 = vmul.f32 %v783_v60, %v642_v19  ;;  %v870_v17 = vmul.f32 %v780_v46, %v639_v15  ;;  %v871_v27 = vmul.f32 %v782_v59, %v641_v18 }
 0x287   :  { %v901_v28 = vcombine.low %v865_v3, %v866_v20  ;;  %v660_v29 = vcombine.high %v658_v9, %v658_v9  ;;  %v667_v6 = vrot.slane %v651_v11, %v1455_v5  ;;  %v674_v30 = vrot.slane %v658_v9, %v1455_v5  ;;  %v1234_v31 = vpop.f32.mrf.mxu1 }
 0x288   :  { %v872_v32 = vmul.f32 %v784_v61, %v643_v25  ;;  %v902_v33 = vcombine.low %v867_v21, %v868_v26  ;;  %v903_v7 = vcombine.low %v869_v22, %v870_v17  ;;  %v681_v8 = vrot.slane %v659_v23, %v1455_v5 }
 0x289   :  { %v911_v34 = vrot.slane %v901_v28, %v1455_v5  ;;  %v688_v35 = vrot.slane %v660_v29, %v1455_v5  ;;  %v689_v36 = vcombine.high %v667_v6, %v667_v6  ;;  %v690_v37 = vcombine.high %v674_v30, %v674_v30 }
 0x28a   :  { %v904_v38 = vcombine.low %v871_v27, %v872_v32  ;;  %v918_v39 = vrot.slane %v902_v33, %v1455_v5  ;;  %v925_v40 = vrot.slane %v903_v7, %v1455_v5  ;;  %v691_v41 = vcombine.high %v681_v8, %v681_v8 }
 0x28b   :  { %v692_v44 = vcombine.high %v688_v35, %v688_v35  ;;  %v873_v45 = vmul.f32 %v1550_v12, %v667_v6  ;;  %v874_v13 = vmul.f32 %v1522_v42, %v681_v8  ;;  %v875_v16 = vmul.f32 %v1525_v43, %v689_v36 }
 0x28c   :  { %v932_v46 = vrot.slane %v904_v38, %v1455_v5  ;;  %v933_v47 = vcombine.low %v911_v34, %v918_v39  ;;  %v876_v48 = vmul.f32 %v844_v53, %v691_v41  ;;  %v877_v49 = vmul.f32 %v846_v54, %v674_v30 }
 0x28d   :  { %v878_v50 = vmul.f32 %v1535_v52, %v688_v35  ;;  %v956_v51 = vrot.slane %v873_v45, %v1455_v5  ;;  %v699_v55 = vrot.slane %v588_v24, %v1455_v5  ;;  %v847_v42 = vcombine.high %v1544_v10, %v1544_v10 }
 0x28e   :  { %v934_v57 = vcombine.low %v925_v40, %v932_v46  ;;  %v965_v58 = vcombine.low %v876_v48, %v877_v49  ;;  %v879_v43 = vmul.f32 %v1544_v10, %v690_v37  ;;  %v964_v53 = vcombine.low %v874_v13, %v875_v16 }
 0x28f   :  { %v963_v59 = vrot.slane %v956_v51, %v1455_v5  ;;  %v700_v54 = vcombine.high %v699_v55, %v699_v55  ;;  %v707_v60 = vrot.slane %v699_v55, %v1455_v5  ;;  %v941_v61 = vrot.slane %v933_v47, %v1455_v5 }
 0x290   :  { %v948_v62 = vrot.slane %v934_v57, %v1455_v5  ;;  %v880_v63 = vmul.f32 %v845_v56, %v692_v44  ;;  %v981_v52 = vrot.slane %v965_v58, %v1455_v5  ;;  %v966_v2 = vcombine.low %v878_v50, %v879_v43 }
 0x291   :  { %v714_v0 = vrot.slane %v700_v54, %v1455_v5  ;;  %v881_v1 = vmul.f32 %v847_v42, %v707_v60  ;;  %v974_v10 = vrot.slane %v964_v53, %v1455_v5  ;;  %v1032_v4 = vsel %vm1031_vm7, %v963_v59, 0.0 }
 0x292   :  { %v949_v3 = vcombine.low %v941_v61, %v948_v62  ;;  %v988_v19 = vrot.slane %v966_v2, %v1455_v5 }
 0x293   :  { %v882_v11 = vmul.f32 %v1550_v12, %v714_v0  ;;  %v967_v14 = vcombine.low %v880_v63, %v881_v1  ;;  %v996_v18 = vcombine.low %v974_v10, %v981_v52 }
 0x294   :  { %v1033_v15 = vadd.f32 %v1032_v4, %v949_v3 }
 0x295   :  { %v995_v20 = vrot.slane %v967_v14, %v1455_v5  ;;  %v1019_v21 = vrot.slane %v882_v11, %v1455_v5  ;;  %v1004_v24 = vrot.slane %v996_v18, %v1455_v5 }
 0x296   :  { %v1034_v22 = vrot.slane %v1033_v15, 4 }
 0x297   :  { %v997_v9 = vcombine.low %v988_v19, %v995_v20  ;;  %v1026_v23 = vrot.slane %v1019_v21, %v1455_v5 }
 0x298   :  { %v1035_v25 = vadd.f32 %v1034_v22, %v1033_v15 }
 0x299   :  { %v1011_v26 = vrot.slane %v997_v9, %v1455_v5  ;;  %v1040_v12 = vsel %vm1031_vm7, %v1026_v23, 0.0 }
 0x29a   :  { %v1036_v27 = vrot.slane %v1035_v25, 2 }
 0x29b   :  { %v1012_v17 = vcombine.low %v1004_v24, %v1011_v26 }
 0x29c   :  { %v1037_v30 = vadd.f32 %v1036_v27, %v1035_v25 }
 0x29d   :  { %v1041_v28 = vadd.f32 %v1040_v12, %v1012_v17 }
 0x29e   :  { %v1038_v32 = vrot.slane %v1037_v30, 1 }
 0x29f   :  { %v1042_v29 = vrot.slane %v1041_v28, 4 }
 0x2a0   :  { %v1039_v8 = vadd.f32 %v1038_v32, %v1037_v30 }
 0x2a1   :  { %v1043_v6 = vadd.f32 %v1042_v29, %v1041_v28 }
 0x2a3   :  { %v1044_v31 = vrot.slane %v1043_v6, 2 }
 0x2a5   :  { %v1045_v33 = vadd.f32 %v1044_v31, %v1043_v6 }
 0x2a7   :  { %v1046_v7 = vrot.slane %v1045_v33, 1 }
 0x2a9   :  { %v1047_v34 = vadd.f32 %v1046_v7, %v1045_v33 }
 0x2ab   :  { %v1059_v35 = vsel %vm186_vm2, %v1047_v34, %v1039_v8 }
 0x2ac   :  { %1244 = vmatmul.mubr.msk.f32.vlgmr.msra.gmra.mxu1 %vm70_vm0, %v1059_v35 }
 0x2ad   :  { %1343 = shalt.err (!%p1340_p5)
}
 0x2ae   :  { %1177 = dma.vmem_to_hbm [thread:$0]  %s1175_s5, 32, %s1601_s4, [#allocation10]   ;;  %v1196_v5 = vld [vmem:[#allocation7 + $0x29] ss:$0 sm:$0xff]  ;;  %vm1132_vm8 = vcmask 254976  }
 0x2af   :  { %s1391_s9 = smov [#allocation8]  }
 0x2b0   :  { %s1164_s10 = sshll.u32 %s1391_s9, 4  ;;  %s1165_s10 = int_to_ptr.vmem [resolvable:$true] %s1164_s10 }
 0x2b1   :  { %s1352_s11 = scalar_lea.vmem %s1165_s10, 32  ;;  %p1357_p7 = scmp.lt.s32.totalorder %s1165_s10, %s1165_s10 }
 0x2b2   :  { %p1353_p6 = scmp.ne.s32.totalorder %s1165_s10, %s1352_s11  ;;  %p1358_p8 = scmp.lt.s32.totalorder %s1352_s11, %s1352_s11 }
 0x2b4   :  { %p1359_p9 = por %p1358_p8, %p1357_p7 }
 0x2b6   :  { %p1360_p10 = pnand %p1359_p9, %p1353_p6 }
 0x36c   :  { %v1128_v36 = vpop.f32.mrf.mxu1 }
 0x36d   :  { %v1129_v37 = vadd.f32 %v1196_v5, %v1128_v36 }
 0x36e   :  { %v1245_v38 = vpop.f32.mrf.mxu1 }
 0x36f   :  { %1133 = vst.msk [vmem:[#allocation8] sm:$0x3] %vm1132_vm8, %v1129_v37 }
 0x370   :  { %1363 = shalt.err (!%p1360_p10)
}
 0x371   :  { %1167 = dma.vmem_to_hbm [thread:$0]  %s1165_s10, 32, %s1600_s3, [#allocation4]  }
 0x372   :  { %1376 = dma.done.wait [#allocation4], 32  }
 0x373   :  { %1377 = vsyncadd [#allocation4], 4294967264 }
 0x374   :  { %1378 = dma.done.wait [#allocation10], 32  }
 0x375   :  { %1379 = vsyncadd [#allocation10], 4294967264 }
 0x376   :  { %1184 = vsyncpa [#allocation3], 1 }
 0x377   :  { %1185 = vsyncpa [#allocation6], 1 }
 0x378   :  { %1186 = vsyncpa [#allocation4], 1 }
 0x379   :  { %1187 = vsyncpa [#allocation10], 1 }

</bundles_post_ra>
